<compile_context>
chip_gen: v7x
topology: tpu7x:2x2x1
jax: 0.10.0
libtpu: 0.0.40
codegen_flags: <defaults>
</compile_context>

<pallas_src>
import functools

import jax
import jax.numpy as jnp
from jax.experimental import pallas as pl
from jax.experimental.pallas import tpu as pltpu

LANE = 128                    # lane width (last dim)
SUBL = 8                      # f32 sublanes per vreg
CHUNK_ROWS = 128              # 16 vreg-rows folded per inner-loop step
SINGLE_MAX_ROWS = 4096        # <= 512K elements -> one-shot kernel
TILE_BYTES = 1 << 20          # ~1 MiB per input per grid step (dtype-aware)
VMEM_LIMIT = 32 * 1024 * 1024 # explicit scoped-VMEM budget for the tiled path


def _round_up(x, m):
    return ((x + m - 1) // m) * m


def _rmse_log_single_kernel(fake_ref, real_ref, out_ref, *, inv_n):
    """Whole array fits in one block: everything in one shot."""
    f = fake_ref[...].astype(jnp.float32)
    r = real_ref[...].astype(jnp.float32)
    d = jnp.log(r) - jnp.log(f)
    out_ref[...] = jnp.sqrt(jnp.sum(d * d, keepdims=True) * inv_n)


def _rmse_log_tiled_kernel(fake_ref, real_ref, out_ref, *,
                           total_rows, blk_rows, chunk_rows, needs_mask):
    """One grid step: fold a (blk_rows, 128) tile into an (8,128) partial.

    The fold runs as an unrolled fori_loop over chunk_rows-row sub-chunks so
    intermediates stay vreg-resident; the per-tile partial is written to its
    own output block (grid axis is "parallel" -> v7x cores split the work).
    """
    base = pl.program_id(0) * blk_rows
    n_chunks = blk_rows // chunk_rows

    def fold(c, acc):
        start = pl.multiple_of(c * chunk_rows, chunk_rows)
        f = fake_ref[pl.ds(start, chunk_rows), :].astype(jnp.float32)
        r = real_ref[pl.ds(start, chunk_rows), :].astype(jnp.float32)
        if needs_mask:
            # Ragged last block: rows beyond the true extent hold garbage.
            # Select the neutral value 1.0 BEFORE log so it never sees them.
            row = base + start + jax.lax.broadcasted_iota(
                jnp.int32, (chunk_rows, LANE), 0)
            valid = row < total_rows
            f = jnp.where(valid, f, 1.0)
            r = jnp.where(valid, r, 1.0)
        d = jnp.log(r) - jnp.log(f)
        sq = d * d
        # Group-of-8-rows reduction is layout-preserving: pure VPU vreg adds.
        return acc + jnp.sum(sq.reshape(chunk_rows // SUBL, SUBL, LANE), axis=0)

    partial = jax.lax.fori_loop(
        0, n_chunks, fold, jnp.zeros((SUBL, LANE), jnp.float32), unroll=True)
    out_ref[...] = partial


def _finalize_kernel(part_ref, out_ref, *, inv_n):
    """Sum the per-tile partials, apply mean + sqrt."""
    out_ref[...] = jnp.sqrt(
        jnp.sum(part_ref[...].astype(jnp.float32), keepdims=True) * inv_n)


def rmse_log(fake: jax.Array, real: jax.Array) -> jax.Array:
    """sqrt(mean(|log(real) - log(fake)|^2)) computed with Pallas TPU kernels."""
    assert fake.shape == real.shape, "fake/real must match shapes"
    total_n = fake.size
    inv_n = 1.0 / float(total_n)

    fake_f = fake.reshape(-1)
    real_f = real.reshape(-1)

    # Only pad when the flattened length is not lane-aligned (rare).  The pad
    # value 1.0 is neutral (log(1)-log(1)==0) and the mean divides by the true
    # element count.  Lane-aligned sizes are reshaped with zero copies.
    if total_n % LANE:
        pad = _round_up(total_n, LANE) - total_n
        fake_f = jnp.pad(fake_f, (0, pad), constant_values=1.0)
        real_f = jnp.pad(real_f, (0, pad), constant_values=1.0)

    rows = fake_f.size // LANE
    fake2d = fake_f.reshape(rows, LANE)
    real2d = real_f.reshape(rows, LANE)

    if rows <= SINGLE_MAX_ROWS:
        # Single-step path: whole array as one lane-dense block, no grid.
        out = pl.pallas_call(
            functools.partial(_rmse_log_single_kernel, inv_n=inv_n),
            out_shape=jax.ShapeDtypeStruct((1, 1), jnp.float32),
        )(fake2d, real2d)
        return out[0, 0]

    # ---- Tiled path: dtype-aware ~1 MiB tiles, ragged tail masked in-kernel.
    itemsize = jnp.dtype(fake.dtype).itemsize
    blk_rows = max(CHUNK_ROWS,
                   (TILE_BYTES // (LANE * itemsize)) // CHUNK_ROWS * CHUNK_ROWS)
    blk_rows = min(blk_rows, _round_up(rows, CHUNK_ROWS))
    n_tiles = pl.cdiv(rows, blk_rows)
    needs_mask = (rows % blk_rows) != 0

    partials = pl.pallas_call(
        functools.partial(_rmse_log_tiled_kernel, total_rows=rows,
                          blk_rows=blk_rows, chunk_rows=CHUNK_ROWS,
                          needs_mask=needs_mask),
        out_shape=jax.ShapeDtypeStruct((n_tiles * SUBL, LANE), jnp.float32),
        grid=(n_tiles,),
        in_specs=[
            pl.BlockSpec((blk_rows, LANE), lambda i: (i, 0)),
            pl.BlockSpec((blk_rows, LANE), lambda i: (i, 0)),
        ],
        out_specs=pl.BlockSpec((SUBL, LANE), lambda i: (i, 0)),
        compiler_params=pltpu.CompilerParams(
            dimension_semantics=("parallel",),
            vmem_limit_bytes=VMEM_LIMIT,
        ),
    )(fake2d, real2d)

    out = pl.pallas_call(
        functools.partial(_finalize_kernel, inv_n=inv_n),
        out_shape=jax.ShapeDtypeStruct((1, 1), jnp.float32),
    )(partials)
    return out[0, 0]


if __name__ == "__main__":
    key = jax.random.PRNGKey(0)
    k1, k2, k3, k4 = jax.random.split(key, 4)

    # Inputs to log() must be positive (same constraint as the PyTorch module).
    shape = (2, 4, 16, 16)
    fake = jax.random.uniform(k1, shape, jnp.float32, minval=0.1, maxval=2.0)
    real = jax.random.uniform(k2, shape, jnp.float32, minval=0.1, maxval=2.0)

    loss = rmse_log(fake, real)
    jax.block_until_ready(loss)
    ref = jnp.sqrt(jnp.mean(jnp.abs(jnp.log(real) - jnp.log(fake)) ** 2))
    assert jnp.allclose(loss, ref, rtol=1e-5, atol=1e-6), (loss, ref)

    # Exercise the tiled path (multi-step grid + ragged-tail mask, no pad).
    big_shape = (2, 4, 300, 300)  # 720000 elems -> rows=5625 -> 3 grid steps
    fake_b = jax.random.uniform(k3, big_shape, jnp.float32, minval=0.1, maxval=2.0)
    real_b = jax.random.uniform(k4, big_shape, jnp.float32, minval=0.1, maxval=2.0)
    loss_b = rmse_log(fake_b, real_b)
    jax.block_until_ready(loss_b)
    ref_b = jnp.sqrt(jnp.mean(jnp.abs(jnp.log(real_b) - jnp.log(fake_b)) ** 2))
    assert jnp.allclose(loss_b, ref_b, rtol=1e-4, atol=1e-6), (loss_b, ref_b)

    # Exercise the non-lane-aligned fallback (tiny neutral pad, single shot).
    odd_shape = (3, 7, 11)
    fake_o = jax.random.uniform(k1, odd_shape, jnp.float32, minval=0.1, maxval=2.0)
    real_o = jax.random.uniform(k2, odd_shape, jnp.float32, minval=0.1, maxval=2.0)
    loss_o = rmse_log(fake_o, real_o)
    jax.block_until_ready(loss_o)
    ref_o = jnp.sqrt(jnp.mean(jnp.abs(jnp.log(real_o) - jnp.log(fake_o)) ** 2))
    assert jnp.allclose(loss_o, ref_o, rtol=1e-5, atol=1e-6), (loss_o, ref_o)

    print("KERNEL_OK")
</pallas_src>

<mosaic_0001>
module attributes {stable_mosaic.version = 11 : i64} {
  func.func @_rmse_log_single_kernel(%arg0: memref<16x128xf32, #tpu.memory_space<vmem>>, %arg1: memref<16x128xf32, #tpu.memory_space<vmem>>, %arg2: memref<1x1xf32, #tpu.memory_space<vmem>>) attributes {dimension_semantics = [], scalar_prefetch = 0 : i64, scratch_operands = 0 : i64, tpu.core_type = #tpu.core_type<tc>} {
    %c0 = arith.constant 0 : index
    %c0_0 = arith.constant 0 : index
    %0 = vector.load %arg0[%c0, %c0_0] : memref<16x128xf32, #tpu.memory_space<vmem>>, vector<16x128xf32>
    %c0_1 = arith.constant 0 : index
    %c0_2 = arith.constant 0 : index
    %1 = vector.load %arg1[%c0_1, %c0_2] : memref<16x128xf32, #tpu.memory_space<vmem>>, vector<16x128xf32>
    %2 = math.log %1 : vector<16x128xf32>
    %3 = math.log %0 : vector<16x128xf32>
    %4 = arith.subf %2, %3 : vector<16x128xf32>
    %5 = arith.mulf %4, %4 : vector<16x128xf32>
    %6 = vector.shape_cast %5 : vector<16x128xf32> to vector<1x16x128xf32>
    %cst = arith.constant dense<0.000000e+00> : vector<1xf32>
    %7 = vector.multi_reduction <add>, %6, %cst [1, 2] : vector<1x16x128xf32> to vector<1xf32>
    %8 = vector.shape_cast %7 : vector<1xf32> to vector<1x1x1xf32>
    %9 = vector.extract %8[0, 0, 0] : f32 from vector<1x1x1xf32>
    %10 = vector.broadcast %9 : f32 to vector<1x1xf32>
    %cst_3 = arith.constant 4.8828125E-4 : f32
    %11 = vector.broadcast %cst_3 : f32 to vector<1x1xf32>
    %12 = arith.mulf %10, %11 : vector<1x1xf32>
    %13 = math.sqrt %12 : vector<1x1xf32>
    %c0_4 = arith.constant 0 : index
    %c0_5 = arith.constant 0 : index
    %14 = vector.load %arg2[%c0_4, %c0_5] : memref<1x1xf32, #tpu.memory_space<vmem>>, vector<1x1xf32>
    tpu.vector_store %arg2[%c0_4, %c0_5], %13 {strides = array<i32>} : memref<1x1xf32, #tpu.memory_space<vmem>>, vector<1x1xf32>,
    return
  }
}

</mosaic_0001>

<bundles_post_ra>
// kernel: tpu_custom_call.1
= control target key start
LH: loop header
LB: loop body
LE: loop exit
PB: predicated region body
PF: predicated region fallthrough
CT: control target
= control target key end

     0   :  { %7 = vsyncpa [#allocation3], 0  ;;  %s238_s0 = inlined_call_operand.hbm [shape: f32[16,128], index: 0, kind: input, shape index: {}]   ;;  %s239_s1 = inlined_call_operand.hbm [shape: f32[16,128], index: 1, kind: input, shape index: {}]   ;;  %s240_s2 = inlined_call_operand.hbm [shape: f32[1,1], index: 2, kind: output, shape index: {}]  }
   0x1   :  { %8 = vsyncpa [#allocation6], 0 }
   0x2   :  { %9 = vsyncpa [#allocation4], 0  ;;  %s182_s9 = smov [#allocation2]   ;;  %s110_s13 = scalar_lea.hbm %s238_s0, 256 }
   0x3   :  { %s15_s10 = sshll.u32 %s182_s9, 4  ;;  %p111_p0 = scmp.ne.s32.totalorder %s238_s0, %s110_s13  ;;  %s16_s10 = int_to_ptr.vmem [resolvable:$true] %s15_s10 }
   0x4   :  { %p114_p1 = scmp.lt.u32.totalorder %s110_s13, %s238_s0 }
   0x6   :  { %p116_p2 = pnand %p114_p1, %p111_p0 }
   0x8   :  { %119 = shalt.err (!%p116_p2)
}
   0x9   :  { %s120_s18 = scalar_lea.vmem %s16_s10, 256  ;;  %p125_p4 = scmp.lt.s32.totalorder %s16_s10, %s16_s10 }
   0xa   :  { %p121_p3 = scmp.ne.s32.totalorder %s16_s10, %s120_s18  ;;  %p126_p5 = scmp.lt.s32.totalorder %s120_s18, %s120_s18 }
   0xc   :  { %p127_p6 = por %p126_p5, %p125_p4 }
   0xe   :  { %p128_p7 = pnand %p127_p6, %p121_p3 }
  0x10   :  { %131 = shalt.err (!%p128_p7)
}
  0x11   :  { %s183_s19 = smov 128   ;;  %s184_s20 = smov 8  }
  0x12   :  { %21 = dma.hbm_to_vmem [thread:$0]  %s238_s0, 256, %s16_s10, [#allocation3], %s183_s19, %s183_s19, %s184_s20  }
  0x13   :  { %s185_s23 = smov [#allocation5]   ;;  %s132_s27 = scalar_lea.hbm %s239_s1, 256 }
  0x14   :  { %s27_s24 = sshll.u32 %s185_s23, 4  ;;  %p133_p8 = scmp.ne.s32.totalorder %s239_s1, %s132_s27  ;;  %s28_s24 = int_to_ptr.vmem [resolvable:$true] %s27_s24 }
  0x15   :  { %p136_p9 = scmp.lt.u32.totalorder %s132_s27, %s239_s1 }
  0x17   :  { %p138_p10 = pnand %p136_p9, %p133_p8 }
  0x19   :  { %141 = shalt.err (!%p138_p10)
}
  0x1a   :  { %s142_s4 = scalar_lea.vmem %s28_s24, 256  ;;  %p147_p12 = scmp.lt.s32.totalorder %s28_s24, %s28_s24 }
  0x1b   :  { %p143_p11 = scmp.ne.s32.totalorder %s28_s24, %s142_s4  ;;  %p148_p13 = scmp.lt.s32.totalorder %s142_s4, %s142_s4 }
  0x1d   :  { %p149_p0 = por %p148_p13, %p147_p12 }
  0x1f   :  { %p150_p1 = pnand %p149_p0, %p143_p11 }
  0x21   :  { %153 = shalt.err (!%p150_p1)
}
  0x22   :  { %33 = dma.hbm_to_vmem [thread:$0]  %s239_s1, 256, %s28_s24, [#allocation6], %s183_s19, %s183_s19, %s184_s20  }
  0x23   :  { %176 = dma.done.wait [#allocation3], 256  }
  0x24   :  { %177 = vsyncadd [#allocation3], 4294967040 }
  0x25   :  { %178 = dma.done.wait [#allocation6], 256  }
  0x26   :  { %179 = vsyncadd [#allocation6], 4294967040  ;;  %v40_v0 = vld [vmem:[#allocation2] sm:$0xff]  ;;  %v42_v1 = vld [vmem:[#allocation5] sm:$0xff]  ;;  %s186_s6 = smov [#allocation7]   ;;  %vm75_vm1 = vcmask 0  }
  0x27   :  { %v41_v2 = vld [vmem:[#allocation2 + $0x8] sm:$0xff]  ;;  %v43_v3 = vld [vmem:[#allocation5 + $0x8] sm:$0xff]  ;;  %100 = vlog2.f32 %v42_v1  ;;  %s83_s7 = sshll.u32 %s186_s6, 4  ;;  %s84_s7 = int_to_ptr.vmem [resolvable:$true] %s83_s7 }
  0x28   :  { %102 = vlog2.f32 %v43_v3  ;;  %s154_s8 = scalar_lea.vmem %s84_s7, 16  ;;  %s158_s9 = scalar_lea.vmem %s84_s7, 32 }
  0x29   :  { %104 = vlog2.f32 %v40_v0  ;;  %p155_p2 = scmp.ne.s32.totalorder %s84_s7, %s154_s8  ;;  %p159_p3 = scmp.lt.s32.totalorder %s84_s7, %s84_s7 }
  0x2a   :  { %106 = vlog2.f32 %v41_v2  ;;  %p160_p4 = scmp.lt.s32.totalorder %s158_s9, %s154_s8 }
  0x2c   :  { %p161_p5 = por %p160_p4, %p159_p3 }
  0x2e   :  { %p162_p6 = pnand %p161_p5, %p155_p2 }
  0x31   :  { %v101_v4 = vpop.eup %100 }
  0x32   :  { %v103_v5 = vpop.eup %102  ;;  %v45_v6 = vmul.f32 0.6931472, %v101_v4 }
  0x33   :  { %v105_v7 = vpop.eup %104  ;;  %v47_v8 = vmul.f32 0.6931472, %v103_v5 }
  0x34   :  { %v107_v9 = vpop.eup %106  ;;  %v49_v10 = vmul.f32 0.6931472, %v105_v7 }
  0x35   :  { %v51_v11 = vmul.f32 0.6931472, %v107_v9 }
  0x36   :  { %v52_v12 = vsub.f32 %v45_v6, %v49_v10 }
  0x37   :  { %v53_v13 = vsub.f32 %v47_v8, %v51_v11 }
  0x38   :  { %v54_v14 = vmul.f32 %v52_v12, %v52_v12 }
  0x39   :  { %v55_v15 = vmul.f32 %v53_v13, %v53_v13 }
  0x3b   :  { %v56_v16 = vadd.f32 %v55_v15, %v54_v14 }
  0x3d   :  { %57 = vadd.xlane.f32.xlu0 %v56_v16 }
  0xca   :  { %v58_v17 = vpop.xlane.xlu0 %57 }
  0xcb   :  { %v59_v18 = vrot.slane %v58_v17, 4 }
  0xcd   :  { %v60_v19 = vadd.f32 %v59_v18, %v58_v17 }
  0xcf   :  { %v61_v20 = vrot.slane %v60_v19, 2 }
  0xd1   :  { %v62_v21 = vadd.f32 %v61_v20, %v60_v19 }
  0xd3   :  { %v63_v22 = vrot.slane %v62_v21, 1 }
  0xd5   :  { %v64_v23 = vadd.f32 %v63_v22, %v62_v21 }
  0xd7   :  { %93 = vpush %v64_v23 }
 0x108   :  { %s94_s1 = spop %93 }
 0x109   :  { %v66_v24 = vstv %s94_s1 }
 0x10a   :  { %v67_v25 = vmul.f32 0.00048828125, %v66_v24 }
 0x10c   :  { %108 = vrsqrt.f32 %v67_v25  ;;  %vm70_vm0 = vcmp.eq.f32.partialorder %v67_v25, inf  ;;  %v73_v28 = vand.u32 2147483648, %v67_v25  ;;  %vm72_vm2 = vcmp.eq.f32.partialorder %v67_v25, 0.0 }
 0x116   :  { %v109_v26 = vpop.eup %108 }
 0x117   :  { %v69_v27 = vmul.f32 %v109_v26, %v67_v25 }
 0x119   :  { %v71_v29 = vsel %vm70_vm0, %v67_v25, %v69_v27 }
 0x11a   :  { %v74_v30 = vsel %vm72_vm2, %v73_v28, %v71_v29 }
 0x11b   :  { %76 = vst.msk [vmem:[#allocation7] sm:$0x1] %vm75_vm1, %v74_v30 }
 0x11c   :  { %165 = shalt.err (!%p162_p6)
}
 0x11d   :  { %s166_s12 = scalar_lea.hbm %s240_s2, 16 }
 0x11e   :  { %p167_p7 = scmp.ne.s32.totalorder %s240_s2, %s166_s12  ;;  %p170_p8 = scmp.lt.u32.totalorder %s166_s12, %s240_s2 }
 0x120   :  { %p172_p9 = pnand %p170_p8, %p167_p7 }
 0x122   :  { %175 = shalt.err (!%p172_p9)
}
 0x123   :  { %86 = dma.vmem_to_hbm [thread:$0]  %s84_s7, 16, %s240_s2, [#allocation4]  }
 0x124   :  { %180 = dma.done.wait [#allocation4], 16  }
 0x125   :  { %181 = vsyncadd [#allocation4], 4294967280 }
 0x126   :  { %90 = vsyncpa [#allocation3], 1 }
 0x127   :  { %91 = vsyncpa [#allocation6], 1 }
 0x128   :  { %92 = vsyncpa [#allocation4], 1 }

</bundles_post_ra>
